<compile_context>
chip_gen: v6e
topology: v6e:2x2x1
jax: 0.10.0
libtpu: 0.0.40
codegen_flags: <defaults>
</compile_context>

<pallas_src>
import functools
import math

import jax
import jax.numpy as jnp
import numpy as np
from jax.experimental import pallas as pl
from jax.experimental.pallas import tpu as pltpu


def _round_up(x, m):
    return ((x + m - 1) // m) * m


def _choose_tm(m_packed, cap):
    """Tile height in packed rows.

    Multiple of 8 (TPU sublane) unless the whole problem fits in one <=8-row
    tile.  Prefers >= 2 grid steps (v7x megacore) and, for large problems, an
    exact divisor of m_packed near the cap so the last tile is not ragged.
    """
    cap = max(8, (cap // 8) * 8)
    if m_packed <= 8:
        return m_packed                                   # one tile == full array
    if m_packed <= 2 * cap:
        # two roughly equal tiles -> both TensorCores busy; last tile may be ragged
        return min(cap, _round_up(-(-m_packed // 2), 8))
    for tm in range(cap, cap // 2, -8):                   # big exact divisor if any
        if m_packed % tm == 0:
            return tm
    return cap


def _stats_kernel(x_ref, colsum_ref, gram_ref, *, m_valid, tm, ragged):
    # Pass 1: x-side moments only (no z).  colsum = sum_rows(x), gram = x^T x.
    # Stays f32 for variance numerics.  Grid axis is "parallel" (per-tile
    # partials, reduced on the host), so v7x's two TCs both contribute.
    x = x_ref[...]
    if ragged:
        # Last tile overhangs the array; Pallas leaves the overhang rows
        # unspecified in VMEM, so zero them before they touch the stats.
        n_valid = m_valid - pl.program_id(0) * tm
        row = jax.lax.broadcasted_iota(jnp.int32, x.shape, 0)
        x = jnp.where(row < n_valid, x, 0.0)
    colsum_ref[...] = jnp.sum(x, axis=0, keepdims=True)
    gram = jax.lax.dot_general(
        x, x, (((0,), (0,)), ((), ())), preferred_element_type=jnp.float32)
    gram_ref[...] = gram[None, :, :]


def _conv_bn_relu_kernel(x_ref, w_ref, b_ref, o_ref):
    # Pass 2: BN folded into the conv.  bf16 MXU matmul, f32 accumulate,
    # f32 bias-add + ReLU, cast only at the store.  Lane-dense (TM, Ko) output.
    x = x_ref[...].astype(jnp.bfloat16)
    z = jnp.dot(x, w_ref[...], preferred_element_type=jnp.float32)
    o_ref[...] = jnp.maximum(z + b_ref[...], 0.0).astype(o_ref.dtype)


def _block_diag(w, pack):
    # w: (C_in, C_out) -> block-diagonal (pack*C_in, pack*C_out)
    c_in, c_out = w.shape
    eye = jnp.eye(pack, dtype=w.dtype)
    return jnp.einsum("pq,ij->piqj", eye, w).reshape(pack * c_in, pack * c_out)


def conv2d_forward(x, weight, bias, gamma, beta, eps=1e-5, out_dtype=None):
    """x: (N, T, V, C_in); weight: (C_out, C_in, 1, 1); returns (N, T, V, C_out).

    out_dtype defaults to x.dtype (f32 parity with the PyTorch module); passing
    jnp.bfloat16 halves the dominant HBM store stream if downstream tolerates it.
    """
    N, T, V, C_in = x.shape
    C_out, C_in_w, kh, kw = weight.shape
    assert kh == 1 and kw == 1, "only the 1x1 / 'VALID' configuration is implemented"
    assert C_in_w == C_in
    M = N * T * V
    out_dtype = x.dtype if out_dtype is None else out_dtype

    w2 = weight[:, :, 0, 0].T.astype(jnp.float32)            # (C_in, C_out)
    bias = bias.reshape(C_out).astype(jnp.float32)
    gamma = gamma.reshape(C_out).astype(jnp.float32)
    beta = beta.reshape(C_out).astype(jnp.float32)

    # Pack PACK spatial rows into the lane dimension (lane-dense loads/stores).
    # PACK also divides M so the packing reshape is a free metadata reshape
    # (no host-side jnp.pad copy).
    PACK = 1
    while PACK * 2 * C_in <= 128 and M % (PACK * 2) == 0:
        PACK *= 2
    Ki = PACK * C_in
    Ko = PACK * C_out
    M_packed = M // PACK

    # Tile cap: keep the f32 output block at ~4 MiB so the double-buffered
    # working set (< ~12 MiB) fits v5e's 16 MiB scoped-VMEM default and v7x's
    # 64 MiB/TC without vmem_limit_bytes overrides, while amortizing the
    # ~0.35 us per-grid-step overhead.
    cap = min(2048, max(8, (4 << 20) // (Ko * 4)))
    TM = _choose_tm(M_packed, cap)
    num_blocks = -(-M_packed // TM)
    grid = (num_blocks,)
    ragged = num_blocks * TM != M_packed

    xp = x.reshape(M, C_in).astype(jnp.float32).reshape(M_packed, Ki)

    # ---- Pass 1: per-tile colsum(x) and Gram x^T x (f32, "parallel" grid) ----
    pcolsum, pgram = pl.pallas_call(
        functools.partial(_stats_kernel, m_valid=M_packed, tm=TM, ragged=ragged),
        out_shape=(
            jax.ShapeDtypeStruct((num_blocks, Ki), jnp.float32),
            jax.ShapeDtypeStruct((num_blocks, Ki, Ki), jnp.float32),
        ),
        grid_spec=pltpu.PrefetchScalarGridSpec(
            num_scalar_prefetch=0,
            grid=grid,
            in_specs=[pl.BlockSpec((TM, Ki), lambda i: (i, 0))],
            out_specs=(
                pl.BlockSpec((1, Ki), lambda i: (i, 0)),
                pl.BlockSpec((1, Ki, Ki), lambda i: (i, 0, 0)),
            ),
        ),
        compiler_params=pltpu.CompilerParams(
            dimension_semantics=("parallel",)),
    )(xp)

    # Tiny host-side reduction: fold the PACK-diagonal C_in x C_in blocks.
    colsum_x = pcolsum.sum(axis=0).reshape(PACK, C_in).sum(axis=0)            # (C_in,)
    G = jnp.einsum("pipj->ij",
                   pgram.sum(axis=0).reshape(PACK, C_in, PACK, C_in))         # (C_in, C_in)

    csum = colsum_x @ w2                                  # sum_rows(x @ W)       (C_out,)
    cssq = jnp.sum((G @ w2) * w2, axis=0)                 # sum_rows((x @ W)^2)   (C_out,)
    mean0 = csum / M                                      # mean of x @ W (bias excluded)
    var = jnp.maximum(cssq / M - mean0 * mean0, 0.0)      # biased var; bias shift-invariant
    scale = gamma * jax.lax.rsqrt(var + eps)
    b_fold_ch = beta - mean0 * scale                      # == bias*scale + shift

    # Fold BN into the conv: y = relu(x @ (W*scale) + (beta - mean0*scale)).
    w_fold = _block_diag(w2 * scale[None, :], PACK).astype(jnp.bfloat16)      # (Ki, Ko) bf16
    b_fold = jnp.tile(b_fold_ch, PACK).reshape(1, Ko).astype(jnp.float32)     # (1, Ko)  f32

    # ---- Pass 2: fused conv + BN affine + ReLU, bf16 MXU, lane-dense output ----
    out_p = pl.pallas_call(
        _conv_bn_relu_kernel,
        out_shape=jax.ShapeDtypeStruct((M_packed, Ko), out_dtype),
        grid_spec=pltpu.PrefetchScalarGridSpec(
            num_scalar_prefetch=0,
            grid=grid,
            in_specs=[
                pl.BlockSpec((TM, Ki), lambda i: (i, 0)),
                pl.BlockSpec((Ki, Ko), lambda i: (0, 0)),
                pl.BlockSpec((1, Ko), lambda i: (0, 0)),
            ],
            out_specs=pl.BlockSpec((TM, Ko), lambda i: (i, 0)),
        ),
        compiler_params=pltpu.CompilerParams(
            dimension_semantics=("parallel",)),
    )(xp, w_fold, b_fold)

    # (M_packed, Ko) is row-major identical to (M, C_out): free reshape, no slice.
    return out_p.reshape(M, C_out).reshape(N, T, V, C_out)


if __name__ == "__main__":
    # Small shapes consistent with the module's usage: (batch, num_step, num_vertex, dims)
    N, T, V, C_in, C_out = 2, 8, 16, 4, 32

    key = jax.random.PRNGKey(0)
    kx, kw = jax.random.split(key)
    x = jax.random.normal(kx, (N, T, V, C_in), dtype=jnp.float32)

    # Deterministic parameter init matching the module's __init__:
    # xavier_uniform_ on conv weight (C_out, C_in, 1, 1), zero bias,
    # BatchNorm2d default gamma=1, beta=0.
    fan_in, fan_out = C_in * 1 * 1, C_out * 1 * 1
    bound = math.sqrt(6.0 / (fan_in + fan_out))
    weight = jax.random.uniform(kw, (C_out, C_in, 1, 1), jnp.float32, -bound, bound)
    bias = jnp.zeros((C_out,), jnp.float32)
    gamma = jnp.ones((C_out,), jnp.float32)
    beta = jnp.zeros((C_out,), jnp.float32)

    out = jax.block_until_ready(conv2d_forward(x, weight, bias, gamma, beta))

    # Pure-JAX reference of the exact PyTorch forward semantics (f32).
    z_ref = x.reshape(-1, C_in) @ weight[:, :, 0, 0].T + bias
    mean = z_ref.mean(axis=0)
    var = z_ref.var(axis=0)                      # biased, as PyTorch BN normalization uses
    ref = jnp.maximum((z_ref - mean) / jnp.sqrt(var + 1e-5) * gamma + beta, 0.0)
    ref = ref.reshape(N, T, V, C_out)

    assert out.shape == (N, T, V, C_out)
    # bf16 matmul operands in pass 2 => compare against the f32 reference with a
    # correspondingly looser tolerance (stats themselves are exact f32).
    assert np.allclose(np.asarray(out), np.asarray(ref), rtol=2e-2, atol=2e-2)

    print("KERNEL_OK")
</pallas_src>

<mosaic_0001>
module attributes {stable_mosaic.version = 11 : i64} {
  func.func @_stats_kernel(%arg0: i32, %arg1: memref<8x128xf32, #tpu.memory_space<vmem>>, %arg2: memref<1x128xf32, #tpu.memory_space<vmem>>, %arg3: memref<1x128x128xf32, #tpu.memory_space<vmem>>) attributes {dimension_semantics = [#tpu.dimension_semantics<parallel>], iteration_bounds = array<i64: 1>, scalar_prefetch = 0 : i64, scratch_operands = 0 : i64, tpu.core_type = #tpu.core_type<tc>, window_params = [{transform_indices = @transform_0, window_bounds = array<i64: 8, 128>}, {transform_indices = @transform_1, window_bounds = array<i64: 1, 128>}, {transform_indices = @transform_2, window_bounds = array<i64: 1, 128, 128>}]} {
    %c0 = arith.constant 0 : index
    %c0_0 = arith.constant 0 : index
    %0 = vector.load %arg1[%c0, %c0_0] : memref<8x128xf32, #tpu.memory_space<vmem>>, vector<8x128xf32>
    %cst = arith.constant dense<0.000000e+00> : vector<128xf32>
    %1 = vector.multi_reduction <add>, %0, %cst [0] : vector<8x128xf32> to vector<128xf32>
    %2 = vector.shape_cast %1 : vector<128xf32> to vector<1x128xf32>
    %c0_1 = arith.constant 0 : index
    %c0_2 = arith.constant 0 : index
    %3 = vector.load %arg2[%c0_1, %c0_2] : memref<1x128xf32, #tpu.memory_space<vmem>>, vector<1x128xf32>
    tpu.vector_store %arg2[%c0_1, %c0_2], %2 {strides = array<i32>} : memref<1x128xf32, #tpu.memory_space<vmem>>, vector<1x128xf32>,
    %cst_3 = arith.constant dense<0.000000e+00> : vector<128x128xf32>
    %4 = tpu.matmul %0, %0, %cst_3 {dimension_numbers = #tpu.dot_dimension_numbers<[0], [0], [1], [1], [0, 1, 1, 1], [], []>} : vector<8x128xf32>, vector<8x128xf32>, vector<128x128xf32> -> vector<128x128xf32>
    %5 = vector.shape_cast %4 : vector<128x128xf32> to vector<1x128x128xf32>
    %c0_4 = arith.constant 0 : index
    %c0_5 = arith.constant 0 : index
    %c0_6 = arith.constant 0 : index
    %6 = vector.load %arg3[%c0_4, %c0_5, %c0_6] : memref<1x128x128xf32, #tpu.memory_space<vmem>>, vector<1x128x128xf32>
    tpu.vector_store %arg3[%c0_4, %c0_5, %c0_6], %5 {strides = array<i32>} : memref<1x128x128xf32, #tpu.memory_space<vmem>>, vector<1x128x128xf32>,
    return
  }
  func.func @transform_0(%arg0: i32) -> (i32, i32) {
    %c0_i32 = arith.constant 0 : i32
    %c0_i32_0 = arith.constant 0 : i32
    return %arg0, %c0_i32 : i32, i32
  }
  func.func @transform_1(%arg0: i32) -> (i32, i32) {
    %c0_i32 = arith.constant 0 : i32
    %c0_i32_0 = arith.constant 0 : i32
    return %arg0, %c0_i32 : i32, i32
  }
  func.func @transform_2(%arg0: i32) -> (i32, i32, i32) {
    %c0_i32 = arith.constant 0 : i32
    %c0_i32_0 = arith.constant 0 : i32
    %c0_i32_1 = arith.constant 0 : i32
    return %arg0, %c0_i32, %c0_i32_0 : i32, i32, i32
  }
}

</mosaic_0001>

<bundles_post_ra>
// kernel: tpu_custom_call.1
= control target key start
LH: loop header
LB: loop body
LE: loop exit
PB: predicated region body
PF: predicated region fallthrough
CT: control target
= control target key end

     0   :  { %8 = vsyncpa [#allocation3], 0  ;;  %s483_s0 = inlined_call_operand.hbm [shape: f32[8,128], index: 0, kind: input, shape index: {}]   ;;  %s484_s1 = inlined_call_operand.hbm [shape: f32[1,128], index: 1, kind: output, shape index: {0}]   ;;  %s485_s2 = inlined_call_operand.hbm [shape: f32[1,128,128], index: 2, kind: output, shape index: {1}]  }
   0x1   :  { %9 = vsyncpa [#allocation4], 0 }
   0x2   :  { %10 = vsyncpa [#allocation7], 0  ;;  %s438_s9 = smov [#allocation2]  }
   0x3   :  { %s17_s10 = sshll.u32 %s438_s9, 4  ;;  %s18_s10 = int_to_ptr.vmem [resolvable:$true] %s17_s10 }
   0x4   :  { %s380_s11 = scalar_lea.vmem %s18_s10, 128  ;;  %p385_p1 = scmp.lt.s32.totalorder %s18_s10, %s18_s10 }
   0x5   :  { %p381_p0 = scmp.ne.s32.totalorder %s18_s10, %s380_s11  ;;  %p386_p2 = scmp.lt.s32.totalorder %s380_s11, %s380_s11 }
   0x7   :  { %p387_p3 = por %p386_p2, %p385_p1 }
   0x9   :  { %p388_p4 = pnand %p387_p3, %p381_p0 }
   0xb   :  { %391 = shalt.err (!%p388_p4)
}
   0xc   :  { %20 = dma.hbm_to_vmem [thread:$0]  %s483_s0, 128, %s18_s10, [#allocation3]  }
   0xd   :  { %432 = dma.done.wait [#allocation3], 128  }
   0xe   :  { %433 = vsyncadd [#allocation3], 4294967168  ;;  %v24_v0 = vld [vmem:[#allocation2] sm:$0xff]  ;;  %vm64_vm0 = vcmask 64512   ;;  %s439_s0 = smov [#allocation5]  }
   0xf   :  { %32 = vxpose.xlu0.b32.start.end [1/1] (short) %v24_v0, 128  ;;  %338 = vmatprep.subr.mxu0 %v24_v0  ;;  %v25_v17 = vrot.slane %v24_v0, 4  ;;  %s280_s14 = sshll.u32 %s439_s0, 4  ;;  %s281_s14 = int_to_ptr.vmem [resolvable:$true] %s280_s14 }
  0x10   :  { %339 = vmatpush3.msra.mxu0 %v24_v0  ;;  %364 = vmatprep.subr.mxu1 %v24_v0  ;;  %s392_s15 = scalar_lea.vmem %s281_s14, 16  ;;  %s396_s16 = scalar_lea.vmem %s281_s14, 32 }
  0x11   :  { %365 = vmatpush3.msra.mxu1 %v24_v0  ;;  %v26_v18 = vadd.f32 %v25_v17, %v24_v0  ;;  %p393_p5 = scmp.ne.s32.totalorder %s281_s14, %s392_s15  ;;  %p397_p6 = scmp.lt.s32.totalorder %s281_s14, %s281_s14 }
  0x12   :  { %p398_p7 = scmp.lt.s32.totalorder %s396_s16, %s392_s15 }
  0x13   :  { %v27_v19 = vrot.slane %v26_v18, 2 }
  0x14   :  { %p399_p8 = por %p398_p7, %p397_p6 }
  0x15   :  { %v28_v20 = vadd.f32 %v27_v19, %v26_v18 }
  0x16   :  { %p400_p9 = pnand %p399_p8, %p393_p5 }
  0x17   :  { %v29_v21 = vrot.slane %v28_v20, 1 }
  0x19   :  { %v30_v22 = vadd.f32 %v29_v21, %v28_v20 }
  0x1b   :  { %31 = vst [vmem:[#allocation5] sm:$0x1] %v30_v22 }
  0x8b   :  { %v48_v1 = vpop.trf.xlu0 }
  0x8c   :  { %340 = vmatprep.mubr.msk.f32.mxu0 %vm64_vm0, %v48_v1 }
  0x8f   :  { %v49_v2 = vpop.trf.xlu0 }
  0x90   :  { %341 = vmatmul.mubr.msk.f32.vlgmr.msra.gmra.mxu0 %vm64_vm0, %v49_v2 }
  0x93   :  { %v50_v3 = vpop.trf.xlu0 }
  0x94   :  { %343 = vmatprep.mubr.msk.f32.mxu0 %vm64_vm0, %v50_v3 }
  0x97   :  { %v51_v4 = vpop.trf.xlu0 }
  0x98   :  { %344 = vmatmul.mubr.msk.f32.gmra.mxu0 %vm64_vm0, %v51_v4 }
  0x9b   :  { %v52_v5 = vpop.trf.xlu0 }
  0x9c   :  { %346 = vmatprep.mubr.msk.f32.mxu0 %vm64_vm0, %v52_v5 }
  0x9f   :  { %v53_v6 = vpop.trf.xlu0 }
  0xa0   :  { %347 = vmatmul.mubr.msk.f32.gmra.mxu0 %vm64_vm0, %v53_v6 }
  0xa3   :  { %v54_v7 = vpop.trf.xlu0 }
  0xa4   :  { %349 = vmatprep.mubr.msk.f32.mxu0 %vm64_vm0, %v54_v7 }
  0xa7   :  { %v55_v8 = vpop.trf.xlu0 }
  0xa8   :  { %350 = vmatmul.mubr.msk.f32.gmra.mxu0 %vm64_vm0, %v55_v8 }
  0xab   :  { %v56_v9 = vpop.trf.xlu0 }
  0xac   :  { %352 = vmatprep.mubr.msk.f32.mxu1 %vm64_vm0, %v56_v9 }
  0xaf   :  { %v57_v10 = vpop.trf.xlu0 }
  0xb0   :  { %353 = vmatmul.mubr.msk.f32.vlgmr.msra.gmra.mxu1 %vm64_vm0, %v57_v10 }
  0xb3   :  { %v58_v11 = vpop.trf.xlu0 }
  0xb4   :  { %355 = vmatprep.mubr.msk.f32.mxu1 %vm64_vm0, %v58_v11 }
  0xb7   :  { %v59_v12 = vpop.trf.xlu0 }
  0xb8   :  { %356 = vmatmul.mubr.msk.f32.gmra.mxu1 %vm64_vm0, %v59_v12 }
  0xbb   :  { %v60_v13 = vpop.trf.xlu0 }
  0xbc   :  { %358 = vmatprep.mubr.msk.f32.mxu1 %vm64_vm0, %v60_v13 }
  0xbf   :  { %v61_v14 = vpop.trf.xlu0 }
  0xc0   :  { %359 = vmatmul.mubr.msk.f32.gmra.mxu1 %vm64_vm0, %v61_v14 }
  0xc3   :  { %v62_v15 = vpop.trf.xlu0 }
  0xc4   :  { %361 = vmatprep.mubr.msk.f32.mxu1 %vm64_vm0, %v62_v15 }
  0xc7   :  { %v63_v16 = vpop.trf.xlu0 }
  0xc8   :  { %362 = vmatmul.mubr.msk.f32.gmra.mxu1 %vm64_vm0, %v63_v16 }
  0xc9   :  { %403 = shalt.err (!%p400_p9)
}
  0xca   :  { %283 = dma.vmem_to_hbm [thread:$0]  %s281_s14, 16, %s484_s1, [#allocation4]  }
  0xcb   :  { %s440_s1 = smov [#allocation6]  }
  0xcc   :  { %s289_s19 = sshll.u32 %s440_s1, 4  ;;  %s290_s19 = int_to_ptr.vmem [resolvable:$true] %s289_s19 }
  0xcd   :  { %s412_s20 = scalar_lea.vmem %s290_s19, 2048  ;;  %p417_p11 = scmp.lt.s32.totalorder %s290_s19, %s290_s19 }
  0xce   :  { %p413_p10 = scmp.ne.s32.totalorder %s290_s19, %s412_s20  ;;  %p418_p12 = scmp.lt.s32.totalorder %s412_s20, %s412_s20 }
  0xd0   :  { %p419_p13 = por %p418_p12, %p417_p11 }
  0xd2   :  { %p420_p0 = pnand %p419_p13, %p413_p10 }
 0x150   :  { %v342_v23 = vpop.f32.mrf.mxu0 }
 0x151   :  { %259 = vst [vmem:[#allocation6 + $0x8] sm:$0xff] %v342_v23 }
 0x152   :  { %v179_v24 = vpop.f32.mrf.mxu0 }
 0x153   :  { %258 = vst [vmem:[#allocation6] sm:$0xff] %v179_v24 }
 0x158   :  { %v345_v25 = vpop.f32.mrf.mxu0 }
 0x159   :  { %261 = vst [vmem:[#allocation6 + $0x18] sm:$0xff] %v345_v25 }
 0x15a   :  { %v189_v26 = vpop.f32.mrf.mxu0 }
 0x15b   :  { %260 = vst [vmem:[#allocation6 + $0x10] sm:$0xff] %v189_v26 }
 0x160   :  { %v348_v27 = vpop.f32.mrf.mxu0 }
 0x161   :  { %263 = vst [vmem:[#allocation6 + $0x28] sm:$0xff] %v348_v27 }
 0x162   :  { %v199_v28 = vpop.f32.mrf.mxu0 }
 0x163   :  { %262 = vst [vmem:[#allocation6 + $0x20] sm:$0xff] %v199_v28 }
 0x168   :  { %v351_v29 = vpop.f32.mrf.mxu0 }
 0x169   :  { %265 = vst [vmem:[#allocation6 + $0x38] sm:$0xff] %v351_v29 }
 0x16a   :  { %v209_v30 = vpop.f32.mrf.mxu0 }
 0x16b   :  { %264 = vst [vmem:[#allocation6 + $0x30] sm:$0xff] %v209_v30 }
 0x170   :  { %v354_v31 = vpop.f32.mrf.mxu1 }
 0x171   :  { %267 = vst [vmem:[#allocation6 + $0x48] sm:$0xff] %v354_v31 }
 0x172   :  { %v219_v32 = vpop.f32.mrf.mxu1 }
 0x173   :  { %266 = vst [vmem:[#allocation6 + $0x40] sm:$0xff] %v219_v32 }
 0x178   :  { %v357_v33 = vpop.f32.mrf.mxu1 }
 0x179   :  { %269 = vst [vmem:[#allocation6 + $0x58] sm:$0xff] %v357_v33 }
 0x17a   :  { %v229_v34 = vpop.f32.mrf.mxu1 }
 0x17b   :  { %268 = vst [vmem:[#allocation6 + $0x50] sm:$0xff] %v229_v34 }
 0x180   :  { %v360_v35 = vpop.f32.mrf.mxu1 }
 0x181   :  { %271 = vst [vmem:[#allocation6 + $0x68] sm:$0xff] %v360_v35 }
 0x182   :  { %v239_v36 = vpop.f32.mrf.mxu1 }
 0x183   :  { %270 = vst [vmem:[#allocation6 + $0x60] sm:$0xff] %v239_v36 }
 0x188   :  { %v363_v37 = vpop.f32.mrf.mxu1 }
 0x189   :  { %273 = vst [vmem:[#allocation6 + $0x78] sm:$0xff] %v363_v37 }
 0x18a   :  { %v249_v38 = vpop.f32.mrf.mxu1 }
 0x18b   :  { %272 = vst [vmem:[#allocation6 + $0x70] sm:$0xff] %v249_v38 }
 0x18c   :  { %423 = shalt.err (!%p420_p0)
}
 0x18d   :  { %s441_s21 = smov 128   ;;  %s442_s22 = smov 8  }
 0x18e   :  { %295 = dma.vmem_to_hbm [thread:$0]  %s290_s19, 2048, %s485_s2, [#allocation7], %s441_s21, %s441_s21, %s442_s22  }
 0x18f   :  { %434 = dma.done.wait [#allocation4], 16  }
 0x190   :  { %435 = vsyncadd [#allocation4], 4294967280 }
 0x191   :  { %436 = dma.done.wait [#allocation7], 2048  }
 0x192   :  { %437 = vsyncadd [#allocation7], 4294965248 }
 0x193   :  { %302 = vsyncpa [#allocation3], 1 }
 0x194   :  { %303 = vsyncpa [#allocation4], 1 }
 0x195   :  { %304 = vsyncpa [#allocation7], 1 }

</bundles_post_ra>
